<compile_context>
chip_gen: v6e
topology: v6e:2x2x1
jax: 0.10.0
libtpu: 0.0.40
codegen_flags: <defaults>
</compile_context>

<pallas_src>
import functools

import jax
import jax.numpy as jnp
from jax import lax
from jax.experimental import pallas as pl
from jax.experimental.pallas import tpu as pltpu

GAMMA_NEG = 4.0   # integer-valued -> specialized in-kernel as (b*b)*(b*b)
GAMMA_POS = 1.0   # integer-valued -> specialized in-kernel as identity
CLIP = 0.05
EPS = 1e-8

_ROW_ALIGN = 32   # valid sublane multiple for f32 (8), bf16 (16) and int8 (32)


def _cdiv(a, b):
    return -(-a // b)


def _round_up(a, b):
    return _cdiv(a, b) * b


def _asl_kernel(x_ref, y_ref, out_ref, *, n_valid_rows):
    """One (tile_rows, C) block of loss accumulated into a resident (8, C) output block."""
    i = pl.program_id(0)          # parallel row-slice
    j = pl.program_id(1)          # reduction step within the slice

    # First visit of this output block: zero the resident accumulator.
    @pl.when(j == 0)
    def _init():
        out_ref[...] = jnp.zeros_like(out_ref)

    x = x_ref[...].astype(jnp.float32)
    # Binarized targets: nonzero == positive (works for int8 / bool / float y).
    is_pos = y_ref[...].astype(jnp.float32) > 0.0

    rows, cols = x.shape

    # Ragged-tail mask: the last block of a slice may extend past N.  Applied
    # with a select (not a multiply) so NaN/garbage in the OOB rows of a
    # partial block cannot leak into the accumulator.
    row_start = (i * pl.num_programs(1) + j) * rows
    local_row = lax.broadcasted_iota(jnp.int32, (rows, 1), 0)
    in_bounds = (row_start + local_row) < n_valid_rows

    # xs_neg = clamp(1 - x + clip, max=1); xs_pos = x (module applies no sigmoid).
    xs_neg = jnp.minimum((1.0 - x) + CLIP, 1.0)

    # y is binary -> pick the active branch once; a single log per element.
    sel = jnp.where(is_pos, x, xs_neg)
    log_term = jnp.log(jnp.maximum(sel, EPS))

    # Asymmetric focusing weight, specialized for gamma_pos=1 / gamma_neg=4:
    #   base = 1 - xs_pos*y - xs_neg*(1-y) = 1 - sel
    #   w    = base          (positives, gamma=1)
    #        = (base^2)^2    (negatives, gamma=4)
    base = 1.0 - sel
    b2 = base * base
    w = jnp.where(is_pos, base, b2 * b2)

    loss = jnp.where(in_bounds, log_term * w, 0.0)

    # Lane-dense partial accumulation: fold 8-row groups onto the resident
    # (8, C) output block (pure VALU adds; the reshape splits only the leading
    # row axis at 8-row boundaries, i.e. along sublane tiles -> a view).
    r_main = (rows // 8) * 8
    if r_main:
        out_ref[...] += jnp.sum(loss[:r_main].reshape(r_main // 8, 8, cols), axis=0)
    if rows % 8:  # only hit by tiny full-extent blocks (rows == N < next mult of 8)
        out_ref[:1, :] += jnp.sum(loss[r_main:], axis=0, keepdims=True)


def _plan_tiling(n_rows, n_parallel, max_tile_rows):
    """Pick (P, n_inner, tile_rows): 32-row-aligned tiles, no fully-OOB blocks."""
    p = max(1, min(n_parallel, _cdiv(n_rows, _ROW_ALIGN)))
    while True:
        rows_per_slice = _cdiv(n_rows, p)
        n_inner = _cdiv(rows_per_slice, max_tile_rows)
        tile_rows = _round_up(_cdiv(rows_per_slice, n_inner), _ROW_ALIGN)
        if tile_rows >= n_rows:
            # Whole problem fits in one block: a block equal to the full row
            # extent is always layout-legal, for any input dtype.
            return 1, 1, n_rows
        if (p * n_inner - 1) * tile_rows < n_rows:   # no fully-OOB blocks
            return p, n_inner, tile_rows
        p -= 1   # shrink the parallel split and retry


def _device_is_v7():
    try:
        return "v7" in jax.devices()[0].device_kind.lower()
    except Exception:
        return False


@functools.partial(jax.jit, static_argnames=("num_parallel", "target_block_bytes"))
def asymmetric_loss(x, y, *, num_parallel=None, target_block_bytes=4 << 20):
    """-sum of the asymmetric loss over all [N, C] elements (gamma 4/1, clip 0.05)."""
    N, C = x.shape
    assert y.shape == (N, C), (x.shape, y.shape)

    # Lane-dense view when C isn't a multiple of 128 (e.g. C=80): the loss is
    # purely elementwise, so a free row-major reshape recovers full vreg/DMA
    # lane utilization and decouples tiling from C.
    if C % 128 != 0 and (N * C) % 128 == 0:
        n_rows, n_cols = (N * C) // 128, 128
        x = x.reshape(n_rows, n_cols)
        y = y.reshape(n_rows, n_cols)
    else:
        n_rows, n_cols = N, C

    is_v7 = _device_is_v7()
    if num_parallel is None:
        num_parallel = 2 if is_v7 else 1     # v7x: 2 TensorCores per chip

    # Biggest row tile keeping the x block ~target_block_bytes (x dominates;
    # 2 inputs x 2 pipeline buffers stays far below the VMEM limit below).
    x_bytes = jnp.dtype(x.dtype).itemsize
    max_tile_rows = max(
        _ROW_ALIGN,
        (target_block_bytes // (x_bytes * n_cols)) // _ROW_ALIGN * _ROW_ALIGN)

    P, n_inner, tile_rows = _plan_tiling(n_rows, num_parallel, max_tile_rows)

    lead_sem = pltpu.CORE_PARALLEL if (is_v7 and P > 1) else pltpu.PARALLEL

    kernel = functools.partial(_asl_kernel, n_valid_rows=n_rows)

    out = pl.pallas_call(
        kernel,
        out_shape=jax.ShapeDtypeStruct((P * 8, n_cols), jnp.float32),
        grid_spec=pltpu.PrefetchScalarGridSpec(
            num_scalar_prefetch=0,
            grid=(P, n_inner),
            in_specs=[
                pl.BlockSpec((tile_rows, n_cols), lambda i, j: (i * n_inner + j, 0)),
                pl.BlockSpec((tile_rows, n_cols), lambda i, j: (i * n_inner + j, 0)),
            ],
            out_specs=pl.BlockSpec((8, n_cols), lambda i, j: (i, 0)),
        ),
        compiler_params=pltpu.CompilerParams(
            dimension_semantics=(lead_sem, pltpu.ARBITRARY),
            vmem_limit_bytes=64 * 1024 * 1024,
        ),
    )(x, y)

    # Tiny (P*8, C) cross-lane/sublane reduction left to XLA in the wrapper.
    return -jnp.sum(out)


def asymmetric_loss_ref(x, y):
    """Pure-JAX transcription of the PyTorch forward (general, unspecialized)."""
    x = x.astype(jnp.float32)
    y = y.astype(jnp.float32)
    anti_y = 1.0 - y
    xs_pos = x
    xs_neg = jnp.minimum(1.0 - x + CLIP, 1.0)
    loss = y * jnp.log(jnp.maximum(xs_pos, EPS))
    loss = loss + anti_y * jnp.log(jnp.maximum(xs_neg, EPS))
    base = 1.0 - xs_pos * y - xs_neg * anti_y
    expo = GAMMA_POS * y + GAMMA_NEG * anti_y
    loss = loss * jnp.power(base, expo)
    return -jnp.sum(loss)


def _check(out, ref, tag):
    assert jnp.allclose(out, ref, rtol=1e-4, atol=1e-3), (tag, out, ref)


if __name__ == "__main__":
    key = jax.random.PRNGKey(0)
    ka, kb, kc, kd, ke, kf, kg, kh = jax.random.split(key, 8)

    # Case A: C multiple of 128, N not tile-aligned; y as int8; default tiling.
    N, C = 88, 128
    xa = jax.random.uniform(ka, (N, C), jnp.float32, minval=0.01, maxval=0.99)
    ya = (jax.random.uniform(kb, (N, C)) > 0.7).astype(jnp.int8)
    out = jax.block_until_ready(asymmetric_loss(xa, ya))
    _check(out, asymmetric_loss_ref(xa, ya), "A")

    # Case B: C=80 (not a multiple of 128) -> lane-dense flatten to (55, 128);
    # small tiles + 2 parallel slices exercise the in-kernel tail mask.
    N, C = 88, 80                      # 88*80 = 55*128
    xb = jax.random.uniform(kc, (N, C), jnp.float32, minval=0.01, maxval=0.99)
    yb = (jax.random.uniform(kd, (N, C)) > 0.7).astype(jnp.int8)
    out = jax.block_until_ready(
        asymmetric_loss(xb, yb, num_parallel=2, target_block_bytes=16 * 1024))
    _check(out, asymmetric_loss_ref(xb, yb), "B")

    # Case C: multi-step reduction along the arbitrary axis (grid (1,2)) with a
    # partial last block; float32 targets.
    N, C = 50, 128
    xc = jax.random.uniform(ke, (N, C), jnp.float32, minval=0.01, maxval=0.99)
    yc = (jax.random.uniform(kf, (N, C)) > 0.7).astype(jnp.float32)
    out = jax.block_until_ready(
        asymmetric_loss(xc, yc, num_parallel=1, target_block_bytes=16 * 1024))
    _check(out, asymmetric_loss_ref(xc, yc), "C")

    # Case D: tiny N (full-extent block, rows not a multiple of 8) with bf16 x.
    N, C = 19, 128
    xd = jax.random.uniform(kg, (N, C), jnp.float32, minval=0.01, maxval=0.99)
    xd = xd.astype(jnp.bfloat16)
    yd = (jax.random.uniform(kh, (N, C)) > 0.7).astype(jnp.int8)
    out = jax.block_until_ready(asymmetric_loss(xd, yd))
    _check(out, asymmetric_loss_ref(xd, yd), "D")

    print("KERNEL_OK")
</pallas_src>

<mosaic_0001>
module attributes {stable_mosaic.version = 11 : i64} {
  func.func @_asl_kernel(%arg0: i32, %arg1: i32, %arg2: memref<88x128xf32, #tpu.memory_space<vmem>>, %arg3: memref<88x128xi8, #tpu.memory_space<vmem>>, %arg4: memref<8x128xf32, #tpu.memory_space<vmem>>) attributes {dimension_semantics = [#tpu.dimension_semantics<parallel>, #tpu.dimension_semantics<arbitrary>], iteration_bounds = array<i64: 1, 1>, scalar_prefetch = 0 : i64, scratch_operands = 0 : i64, tpu.core_type = #tpu.core_type<tc>, window_params = [{transform_indices = @transform_0, window_bounds = array<i64: 88, 128>}, {transform_indices = @transform_1, window_bounds = array<i64: 88, 128>}, {transform_indices = @transform_2, window_bounds = array<i64: 8, 128>}]} {
    %c0_i32 = arith.constant 0 : i32
    %0 = arith.cmpi eq, %arg1, %c0_i32 : i32
    %1 = arith.extui %0 : i1 to i32
    %c0_i32_0 = arith.constant 0 : i32
    %2 = arith.cmpi ne, %1, %c0_i32_0 : i32
    scf.if %2 {
      %cst_16 = arith.constant 0.000000e+00 : f32
      %41 = vector.broadcast %cst_16 : f32 to vector<8x128xf32>
      %c0_17 = arith.constant 0 : index
      %c0_18 = arith.constant 0 : index
      %42 = vector.load %arg4[%c0_17, %c0_18] : memref<8x128xf32, #tpu.memory_space<vmem>>, vector<8x128xf32>
      tpu.vector_store %arg4[%c0_17, %c0_18], %41 {strides = array<i32>} : memref<8x128xf32, #tpu.memory_space<vmem>>, vector<8x128xf32>,
    } else {
    }
    %c0 = arith.constant 0 : index
    %c0_1 = arith.constant 0 : index
    %3 = vector.load %arg2[%c0, %c0_1] : memref<88x128xf32, #tpu.memory_space<vmem>>, vector<88x128xf32>
    %c0_2 = arith.constant 0 : index
    %c0_3 = arith.constant 0 : index
    %4 = vector.load %arg3[%c0_2, %c0_3] : memref<88x128xi8, #tpu.memory_space<vmem>>, vector<88x128xi8>
    %5 = arith.sitofp %4 : vector<88x128xi8> to vector<88x128xf32>
    %cst = arith.constant 0.000000e+00 : f32
    %6 = vector.broadcast %cst : f32 to vector<88x128xf32>
    %7 = arith.cmpf ogt, %5, %6 : vector<88x128xf32>
    %c1_i32 = arith.constant 1 : i32
    %8 = arith.muli %arg0, %c1_i32 : i32
    %9 = arith.addi %8, %arg1 : i32
    %c88_i32 = arith.constant 88 : i32
    %10 = arith.muli %9, %c88_i32 : i32
    %11 = tpu.iota {dimensions = array<i32: 0>} : vector<88x1xi32>
    %12 = vector.broadcast %10 : i32 to vector<88x1xi32>
    %13 = arith.addi %12, %11 : vector<88x1xi32>
    %c88_i32_4 = arith.constant 88 : i32
    %14 = vector.broadcast %c88_i32_4 : i32 to vector<88x1xi32>
    %15 = arith.cmpi slt, %13, %14 : vector<88x1xi32>
    %cst_5 = arith.constant 1.000000e+00 : f32
    %16 = vector.broadcast %cst_5 : f32 to vector<88x128xf32>
    %17 = arith.subf %16, %3 : vector<88x128xf32>
    %cst_6 = arith.constant 5.000000e-02 : f32
    %18 = vector.broadcast %cst_6 : f32 to vector<88x128xf32>
    %19 = arith.addf %17, %18 : vector<88x128xf32>
    %cst_7 = arith.constant 1.000000e+00 : f32
    %20 = vector.broadcast %cst_7 : f32 to vector<88x128xf32>
    %21 = arith.minimumf %19, %20 : vector<88x128xf32>
    %22 = arith.select %7, %3, %21 : vector<88x128xi1>, vector<88x128xf32>
    %cst_8 = arith.constant 9.99999993E-9 : f32
    %23 = vector.broadcast %cst_8 : f32 to vector<88x128xf32>
    %24 = arith.maximumf %22, %23 : vector<88x128xf32>
    %25 = math.log %24 : vector<88x128xf32>
    %cst_9 = arith.constant 1.000000e+00 : f32
    %26 = vector.broadcast %cst_9 : f32 to vector<88x128xf32>
    %27 = arith.subf %26, %22 : vector<88x128xf32>
    %28 = arith.mulf %27, %27 : vector<88x128xf32>
    %29 = arith.mulf %28, %28 : vector<88x128xf32>
    %30 = arith.select %7, %27, %29 : vector<88x128xi1>, vector<88x128xf32>
    %31 = arith.mulf %25, %30 : vector<88x128xf32>
    %cst_10 = arith.constant 0.000000e+00 : f32
    %32 = vector.shape_cast %15 : vector<88x1xi1> to vector<88x1xi1>
    %33 = vector.broadcast %32 : vector<88x1xi1> to vector<88x128xi1>
    %34 = vector.broadcast %cst_10 : f32 to vector<88x128xf32>
    %35 = arith.select %33, %31, %34 : vector<88x128xi1>, vector<88x128xf32>
    %c0_11 = arith.constant 0 : index
    %c0_12 = arith.constant 0 : index
    %36 = vector.load %arg4[%c0_11, %c0_12] : memref<8x128xf32, #tpu.memory_space<vmem>>, vector<8x128xf32>
    %37 = vector.shape_cast %35 : vector<88x128xf32> to vector<11x8x128xf32>
    %cst_13 = arith.constant dense<0.000000e+00> : vector<8x128xf32>
    %38 = vector.multi_reduction <add>, %37, %cst_13 [0] : vector<11x8x128xf32> to vector<8x128xf32>
    %39 = arith.addf %36, %38 : vector<8x128xf32>
    %c0_14 = arith.constant 0 : index
    %c0_15 = arith.constant 0 : index
    %40 = vector.load %arg4[%c0_14, %c0_15] : memref<8x128xf32, #tpu.memory_space<vmem>>, vector<8x128xf32>
    tpu.vector_store %arg4[%c0_14, %c0_15], %39 {strides = array<i32>} : memref<8x128xf32, #tpu.memory_space<vmem>>, vector<8x128xf32>,
    return
  }
  func.func @transform_0(%arg0: i32, %arg1: i32) -> (i32, i32) {
    %c1_i32 = arith.constant 1 : i32
    %0 = arith.muli %arg0, %c1_i32 : i32
    %1 = arith.addi %0, %arg1 : i32
    %c0_i32 = arith.constant 0 : i32
    %c0_i32_0 = arith.constant 0 : i32
    return %1, %c0_i32 : i32, i32
  }
  func.func @transform_1(%arg0: i32, %arg1: i32) -> (i32, i32) {
    %c1_i32 = arith.constant 1 : i32
    %0 = arith.muli %arg0, %c1_i32 : i32
    %1 = arith.addi %0, %arg1 : i32
    %c0_i32 = arith.constant 0 : i32
    %c0_i32_0 = arith.constant 0 : i32
    return %1, %c0_i32 : i32, i32
  }
  func.func @transform_2(%arg0: i32, %arg1: i32) -> (i32, i32) {
    %c0_i32 = arith.constant 0 : i32
    %c0_i32_0 = arith.constant 0 : i32
    return %arg0, %c0_i32 : i32, i32
  }
}

</mosaic_0001>

<bundles_post_ra>
// kernel: asymmetric_loss.1
= control target key start
LH: loop header
LB: loop body
LE: loop exit
PB: predicated region body
PF: predicated region fallthrough
CT: control target
= control target key end

     0   :  { %7 = vsyncpa [#allocation3], 0  ;;  %s580_s0 = inlined_call_operand.hbm [shape: f32[88,128], index: 0, kind: input, shape index: {}]   ;;  %s581_s1 = inlined_call_operand.hbm [shape: s8[88,128], index: 1, kind: input, shape index: {}]   ;;  %s582_s2 = inlined_call_operand.vmem [shape: f32[8,128], index: 2, kind: output, shape index: {}]  }
   0x1   :  { %8 = vsyncpa [#allocation5], 0  ;;  %s429_s9 = smov [#allocation2]  }
   0x2   :  { %s18_s10 = sshll.u32 %s429_s9, 4  ;;  %s19_s10 = int_to_ptr.vmem [resolvable:$true] %s18_s10 }
   0x3   :  { %s393_s11 = scalar_lea.vmem %s19_s10, 1408  ;;  %p398_p1 = scmp.lt.s32.totalorder %s19_s10, %s19_s10 }
   0x4   :  { %p394_p0 = scmp.ne.s32.totalorder %s19_s10, %s393_s11  ;;  %p399_p2 = scmp.lt.s32.totalorder %s393_s11, %s393_s11 }
   0x6   :  { %p400_p3 = por %p399_p2, %p398_p1 }
   0x8   :  { %p401_p4 = pnand %p400_p3, %p394_p0 }
   0xa   :  { %404 = shalt.err (!%p401_p4)
}
   0xb   :  { %s430_s12 = smov 128   ;;  %s431_s13 = smov 8  }
   0xc   :  { %24 = dma.hbm_to_vmem [thread:$0]  %s580_s0, 1408, %s19_s10, [#allocation3], %s430_s12, %s430_s12, %s431_s13  }
   0xd   :  { %s432_s16 = smov [#allocation4]  }
   0xe   :  { %s34_s17 = sshll.u32 %s432_s16, 4  ;;  %s35_s17 = int_to_ptr.vmem [resolvable:$true] %s34_s17 }
   0xf   :  { %s413_s18 = scalar_lea.vmem %s35_s17, 352  ;;  %p418_p6 = scmp.lt.s32.totalorder %s35_s17, %s35_s17 }
  0x10   :  { %p414_p5 = scmp.ne.s32.totalorder %s35_s17, %s413_s18  ;;  %p419_p7 = scmp.lt.s32.totalorder %s413_s18, %s413_s18 }
  0x12   :  { %p420_p8 = por %p419_p7, %p418_p6 }
  0x14   :  { %p421_p9 = pnand %p420_p8, %p414_p5 }
  0x16   :  { %424 = shalt.err (!%p421_p9)
}
  0x17   :  { %s433_s19 = smov 32   ;;  %s434_s20 = smov 2  }
  0x18   :  { %40 = dma.hbm_to_vmem [thread:$0]  %s581_s1, 352, %s35_s17, [#allocation5], %s433_s19, %s433_s19, %s434_s20  }
  0x19   :  { %425 = dma.done.wait [#allocation3], 1408  }
  0x1a   :  { %426 = vsyncadd [#allocation3], 4294965888 }
  0x1b   :  { %427 = dma.done.wait [#allocation5], 352  }
  0x1c   :  { %428 = vsyncadd [#allocation5], 4294966944  ;;  %v456_v0 = vld [vmem:[#allocation2] sm:$0xff]  ;;  %v458_v1 = vld [vmem:[#allocation2 + $0x8] sm:$0xff] }
  0x1d   :  { %v460_v2 = vld [vmem:[#allocation2 + $0x10] sm:$0xff]  ;;  %v462_v3 = vld [vmem:[#allocation2 + $0x18] sm:$0xff]  ;;  %v353_v9 = vld [vmem:[#allocation4 + $0x8] sm:$0xff]   ;;  %v148_v13 = vsub.f32 1.0, %v456_v0  ;;  %v149_v14 = vsub.f32 1.0, %v458_v1 }
  0x1e   :  { %v333_v4 = vld [vmem:[#allocation4] sm:$0xff]   ;;  %v355_v10 = vld [vmem:[#allocation4 + $0x10] sm:$0xf]   ;;  %v464_v11 = vld [vmem:[#allocation2 + $0x20] sm:$0xff]  ;;  %v150_v15 = vsub.f32 1.0, %v460_v2  ;;  %v342_v19 = vunpack.c.0.s8 %v353_v9  ;;  %v343_v20 = vunpack.c.1.s8 %v353_v9  ;;  %v346_v21 = vunpack.c.2.s8 %v353_v9 }
  0x1f   :  { %v334_v5 = vunpack.c.0.s8 %v333_v4  ;;  %v335_v6 = vunpack.c.1.s8 %v333_v4  ;;  %v338_v7 = vunpack.c.2.s8 %v333_v4  ;;  %v339_v8 = vunpack.c.3.s8 %v333_v4  ;;  %v466_v12 = vld [vmem:[#allocation2 + $0x28] sm:$0xff]  ;;  %v471_v16 = vld [vmem:[#allocation2 + $0x30] sm:$0xff]  ;;  %v473_v17 = vld [vmem:[#allocation2 + $0x38] sm:$0xff] }
  0x20   :  { %v475_v18 = vld [vmem:[#allocation2 + $0x40] sm:$0xff]  ;;  %v151_v22 = vsub.f32 1.0, %v462_v3  ;;  %v347_v23 = vunpack.c.3.s8 %v353_v9  ;;  %v350_v24 = vunpack.c.0.s8 %v355_v10  ;;  %v77_v25 = vld [vmem:[#allocation4 + $0x14] sm:$0x3]  ;;  %v152_v30 = vsub.f32 1.0, %v464_v11  ;;  %v505_v43 = vld [vmem:[#allocation2 + $0x50] sm:$0xff] }
  0x21   :  { %v478_v26 = vcvt.s32.f32 %v334_v5  ;;  %v480_v27 = vcvt.s32.f32 %v335_v6  ;;  %v482_v28 = vcvt.s32.f32 %v338_v7  ;;  %v484_v29 = vcvt.s32.f32 %v339_v8  ;;  %v488_v32 = vld [vmem:[#allocation2 + $0x48] sm:$0xff] }
  0x22   :  { %v153_v31 = vsub.f32 1.0, %v466_v12  ;;  %v351_v33 = vunpack.c.1.s8 %v355_v10  ;;  %v154_v34 = vsub.f32 1.0, %v471_v16  ;;  %v155_v35 = vsub.f32 1.0, %v473_v17 }
  0x23   :  { %v156_v36 = vsub.f32 1.0, %v475_v18  ;;  %v88_v37 = vunpack.c.0.s8 %v77_v25  ;;  %v493_v38 = vcvt.s32.f32 %v342_v19  ;;  %v495_v39 = vcvt.s32.f32 %v343_v20 }
  0x24   :  { %v497_v40 = vcvt.s32.f32 %v346_v21  ;;  %v499_v41 = vcvt.s32.f32 %v347_v23  ;;  %v501_v42 = vcvt.s32.f32 %v350_v24  ;;  %vm100_vm0 = vcmp.gt.f32.partialorder %v478_v26, 0.0 }
  0x25   :  { %vm101_vm1 = vcmp.gt.f32.partialorder %v480_v27, 0.0  ;;  %vm102_vm2 = vcmp.gt.f32.partialorder %v482_v28, 0.0  ;;  %vm103_vm3 = vcmp.gt.f32.partialorder %v484_v29, 0.0  ;;  %v157_v44 = vsub.f32 1.0, %v488_v32 }
  0x26   :  { %v159_v45 = vadd.f32 0.05, %v148_v13  ;;  %v510_v46 = vcvt.s32.f32 %v351_v33  ;;  %v160_v47 = vadd.f32 0.05, %v149_v14  ;;  %v161_v48 = vadd.f32 0.05, %v150_v15 }
  0x27   :  { %v162_v49 = vadd.f32 0.05, %v151_v22  ;;  %v512_v50 = vcvt.s32.f32 %v88_v37  ;;  %v163_v51 = vadd.f32 0.05, %v152_v30  ;;  %v164_v52 = vadd.f32 0.05, %v153_v31 }
  0x28   :  { %v165_v53 = vadd.f32 0.05, %v154_v34  ;;  %vm104_vm4 = vcmp.gt.f32.partialorder %v493_v38, 0.0  ;;  %vm105_vm5 = vcmp.gt.f32.partialorder %v495_v39, 0.0  ;;  %v158_v54 = vsub.f32 1.0, %v505_v43 }
  0x29   :  { %v166_v55 = vadd.f32 0.05, %v155_v35  ;;  %v167_v56 = vadd.f32 0.05, %v156_v36  ;;  %v170_v57 = vmin.f32 %v159_v45, 1.0  ;;  %v171_v58 = vmin.f32 %v160_v47, 1.0 }
  0x2a   :  { %v172_v59 = vmin.f32 %v161_v48, 1.0  ;;  %vm106_vm6 = vcmp.gt.f32.partialorder %v497_v40, 0.0  ;;  %v173_v60 = vmin.f32 %v162_v49, 1.0  ;;  %v174_v61 = vmin.f32 %v163_v51, 1.0 }
  0x2b   :  { %v175_v62 = vmin.f32 %v164_v52, 1.0  ;;  %vm107_vm7 = vcmp.gt.f32.partialorder %v499_v41, 0.0  ;;  %v168_v63 = vadd.f32 0.05, %v157_v44  ;;  %v176_v4 = vmin.f32 %v165_v53, 1.0 }
  0x2c   :  { %v177_v5 = vmin.f32 %v166_v55, 1.0  ;;  %v181_v6 = vsel %vm100_vm0, %v456_v0, %v170_v57  ;;  %v182_v7 = vsel %vm101_vm1, %v458_v1, %v171_v58  ;;  %v183_v8 = vsel %vm102_vm2, %v460_v2, %v172_v59 }
  0x2d   :  { %v184_v9 = vsel %vm103_vm3, %v462_v3, %v173_v60  ;;  %vm108_vm8 = vcmp.gt.f32.partialorder %v501_v42, 0.0  ;;  %v169_v10 = vadd.f32 0.05, %v158_v54  ;;  %v178_v13 = vmin.f32 %v167_v56, 1.0 }
  0x2e   :  { %v185_v0 = vsel %vm104_vm4, %v464_v11, %v174_v61  ;;  %vm109_vm9 = vcmp.gt.f32.partialorder %v510_v46, 0.0  ;;  %vm110_vm10 = vcmp.gt.f32.partialorder %v512_v50, 0.0  ;;  %v186_v1 = vsel %vm105_vm5, %v466_v12, %v175_v62 }
  0x2f   :  { %v192_v2 = vmax.f32 %v181_v6, 1e-08  ;;  %v187_v3 = vsel %vm106_vm6, %v471_v16, %v176_v4  ;;  %v193_v14 = vmax.f32 %v182_v7, 1e-08  ;;  %v194_v15 = vmax.f32 %v183_v8, 1e-08 }
  0x30   :  { %v195_v19 = vmax.f32 %v184_v9, 1e-08  ;;  %v179_v20 = vmin.f32 %v168_v63, 1.0  ;;  %v188_v11 = vsel %vm107_vm7, %v473_v17, %v177_v5  ;;  %v196_v21 = vmax.f32 %v185_v0, 1e-08 }
  0x31   :  { %363 = vlog2.f32 %v192_v2  ;;  %v180_v22 = vmin.f32 %v169_v10, 1.0  ;;  %v189_v12 = vsel %vm108_vm8, %v475_v18, %v178_v13  ;;  %v197_v23 = vmax.f32 %v186_v1, 1e-08 }
  0x32   :  { %365 = vlog2.f32 %v193_v14  ;;  %v198_v24 = vmax.f32 %v187_v3, 1e-08  ;;  %v225_v16 = vsub.f32 1.0, %v181_v6  ;;  %v226_v25 = vsub.f32 1.0, %v182_v7 }
  0x33   :  { %367 = vlog2.f32 %v194_v15  ;;  %v199_v30 = vmax.f32 %v188_v11, 1e-08  ;;  %v227_v31 = vsub.f32 1.0, %v183_v8  ;;  %v190_v17 = vsel %vm109_vm9, %v488_v32, %v179_v20 }
  0x34   :  { %369 = vlog2.f32 %v195_v19  ;;  %v228_v33 = vsub.f32 1.0, %v184_v9  ;;  %v191_v34 = vsel %vm110_vm10, %v505_v43, %v180_v22  ;;  %v200_v18 = vmax.f32 %v189_v12, 1e-08 }
  0x35   :  { %371 = vlog2.f32 %v196_v21  ;;  %v229_v35 = vsub.f32 1.0, %v185_v0  ;;  %v236_v36 = vmul.f32 %v225_v16, %v225_v16  ;;  %v237_v37 = vmul.f32 %v226_v25, %v226_v25 }
  0x36   :  { %373 = vlog2.f32 %v197_v23  ;;  %v201_v44 = vmax.f32 %v190_v17, 1e-08  ;;  %v238_v45 = vmul.f32 %v227_v31, %v227_v31  ;;  %v230_v47 = vsub.f32 1.0, %v186_v1 }
  0x37   :  { %375 = vlog2.f32 %v198_v24  ;;  %v239_v48 = vmul.f32 %v228_v33, %v228_v33  ;;  %v202_v49 = vmax.f32 %v191_v34, 1e-08  ;;  %v247_v32 = vmul.f32 %v236_v36, %v236_v36 }
  0x38   :  { %377 = vlog2.f32 %v199_v30  ;;  %v231_v51 = vsub.f32 1.0, %v187_v3  ;;  %v240_v52 = vmul.f32 %v229_v35, %v229_v35  ;;  %v248_v53 = vmul.f32 %v237_v37, %v237_v37 }
  0x39   :  { %379 = vlog2.f32 %v200_v18  ;;  %v232_v54 = vsub.f32 1.0, %v188_v11  ;;  %v249_v43 = vmul.f32 %v238_v45, %v238_v45  ;;  %v241_v55 = vmul.f32 %v230_v47, %v230_v47 }
  0x3a   :  { %381 = vlog2.f32 %v201_v44  ;;  %v250_v56 = vmul.f32 %v239_v48, %v239_v48  ;;  %v233_v58 = vsub.f32 1.0, %v189_v12  ;;  %v258_v59 = vsel %vm100_vm0, %v225_v16, %v247_v32 }
  0x3b   :  { %383 = vlog2.f32 %v202_v49  ;;  %v242_v62 = vmul.f32 %v231_v51, %v231_v51  ;;  %v251_v63 = vmul.f32 %v240_v52, %v240_v52  ;;  %v259_v4 = vsel %vm101_vm1, %v226_v25, %v248_v53 }
  0x3c   :  { %v234_v7 = vsub.f32 1.0, %v190_v17  ;;  %v243_v8 = vmul.f32 %v232_v54, %v232_v54  ;;  %v260_v9 = vsel %vm102_vm2, %v227_v31, %v249_v43  ;;  %v252_v0 = vmul.f32 %v241_v55, %v241_v55 }
  0x3d   :  { %v261_v26 = vsel %vm103_vm3, %v228_v33, %v250_v56  ;;  %v235_v14 = vsub.f32 1.0, %v191_v34  ;;  %v244_v15 = vmul.f32 %v233_v58, %v233_v58  ;;  %v253_v11 = vmul.f32 %v242_v62, %v242_v62 }
  0x3e   :  { %v364_v57 = vpop.eup %363  ;;  %v262_v21 = vsel %vm104_vm4, %v229_v35, %v251_v63  ;;  %v245_v29 = vmul.f32 %v234_v7, %v234_v7  ;;  %v254_v25 = vmul.f32 %v243_v8, %v243_v8  ;;  %v263_v30 = vsel %vm105_vm5, %v230_v47, %v252_v0 }
  0x3f   :  { %v366_v60 = vpop.eup %365  ;;  %v204_v61 = vmul.f32 0.6931472, %v364_v57  ;;  %v246_v18 = vmul.f32 %v235_v14, %v235_v14  ;;  %v255_v36 = vmul.f32 %v244_v15, %v244_v15  ;;  %v264_v38 = vsel %vm106_vm6, %v231_v51, %v253_v11 }
  0x40   :  { %v368_v5 = vpop.eup %367  ;;  %v206_v6 = vmul.f32 0.6931472, %v366_v60  ;;  %v256_v48 = vmul.f32 %v245_v29, %v245_v29  ;;  %v265_v49 = vsel %vm107_vm7, %v232_v54, %v254_v25 }
  0x41   :  { %v370_v10 = vpop.eup %369  ;;  %v208_v13 = vmul.f32 0.6931472, %v368_v5  ;;  %v269_v1 = vmul.f32 %v258_v59, %v204_v61  ;;  %v257_v53 = vmul.f32 %v246_v18, %v246_v18  ;;  %v266_v43 = vsel %vm108_vm8, %v233_v58, %v255_v36 }
  0x42   :  { %v372_v2 = vpop.eup %371  ;;  %v210_v3 = vmul.f32 0.6931472, %v370_v10  ;;  %v270_v27 = vmul.f32 %v259_v4, %v206_v6  ;;  %v267_v51 = vsel %vm109_vm9, %v234_v7, %v256_v48 }
  0x43   :  { %v374_v19 = vpop.eup %373  ;;  %v212_v20 = vmul.f32 0.6931472, %v372_v2  ;;  %v271_v28 = vmul.f32 %v260_v9, %v208_v13  ;;  %v268_v41 = vsel %vm110_vm10, %v235_v14, %v257_v53 }
  0x44   :  { %v376_v22 = vpop.eup %375  ;;  %v214_v12 = vmul.f32 0.6931472, %v374_v19  ;;  %v272_v23 = vmul.f32 %v261_v26, %v210_v3  ;;  %v314_v24 = vadd.f32 %v270_v27, %v269_v1 }
  0x45   :  { %v378_v16 = vpop.eup %377  ;;  %v216_v31 = vmul.f32 0.6931472, %v376_v22  ;;  %v273_v17 = vmul.f32 %v262_v21, %v212_v20 }
  0x46   :  { %v315_v33 = vadd.f32 %v314_v24, %v271_v28  ;;  %v380_v34 = vpop.eup %379  ;;  %v218_v35 = vmul.f32 0.6931472, %v378_v16  ;;  %v274_v37 = vmul.f32 %v263_v30, %v214_v12 }
  0x47   :  { %v382_v45 = vpop.eup %381  ;;  %v220_v32 = vmul.f32 0.6931472, %v380_v34  ;;  %v275_v39 = vmul.f32 %v264_v38, %v216_v31 }
  0x48   :  { %v316_v44 = vadd.f32 %v315_v33, %v272_v23  ;;  %v384_v52 = vpop.eup %383  ;;  %v222_v55 = vmul.f32 0.6931472, %v382_v45  ;;  %v276_v56 = vmul.f32 %v265_v49, %v218_v35 }
  0x49   :  { %v224_v57 = vmul.f32 0.6931472, %v384_v52  ;;  %v277_v59 = vmul.f32 %v266_v43, %v220_v32 }
  0x4a   :  { %v317_v47 = vadd.f32 %v316_v44, %v273_v17  ;;  %v278_v54 = vmul.f32 %v267_v51, %v222_v55 }
  0x4b   :  { %v279_v62 = vmul.f32 %v268_v41, %v224_v57 }
  0x4c   :  { %v318_v40 = vadd.f32 %v317_v47, %v274_v37 }
  0x4e   :  { %v319_v60 = vadd.f32 %v318_v40, %v275_v39 }
  0x50   :  { %v320_v61 = vadd.f32 %v319_v60, %v276_v56 }
  0x52   :  { %v321_v63 = vadd.f32 %v320_v61, %v277_v59 }
  0x54   :  { %v322_v4 = vadd.f32 %v321_v63, %v278_v54 }
  0x56   :  { %v323_v5 = vadd.f32 %v322_v4, %v279_v62 }
  0x58   :  { %325 = vst [vmem:[%s582_s2] sm:$0xff] %v323_v5 }
  0x59   :  { %330 = vsyncpa [#allocation3], 1 }
  0x5a   :  { %331 = vsyncpa [#allocation5], 1 }

</bundles_post_ra>
